<compile_context>
chip_gen: v5e
topology: v5e:2x2
jax: 0.10.0
libtpu: 0.0.40
codegen_flags: <defaults>
</compile_context>

<pallas_src>
import functools

import jax
import jax.numpy as jnp
import numpy as np
from jax.experimental import pallas as pl
from jax.experimental.pallas import tpu as pltpu

_C_PAD = 8  # sublane-dense output-channel padding


def _convt_poly_kernel(x_ref, w_ref, b_ref, o_ref, *, c_in, c_pad, lpad, s,
                       phase_taps):
    # x_ref: (1, C_in, LPAD)      f32 VMEM  raw input row(s), lane-padded
    # w_ref: (C_in, C_PAD, K)     f32 VMEM  weights, out-channel on sublanes
    # b_ref: (C_PAD, 1)           f32 VMEM  bias column
    # o_ref: (1, C_PAD, S*LPAD)   f32 VMEM  lane-interleaved phases (dense tile)
    needed_shifts = sorted({d for taps in phase_taps for (_, d) in taps})
    needed_kk = sorted({kk for taps in phase_taps for (kk, _) in taps})

    # Bias slab, built once.
    bias_slab = jnp.broadcast_to(b_ref[...], (c_pad, lpad))

    # Hoisted weight tap columns: one load + one lane splat per (ci, kk).
    w_slab = {}
    for ci in range(c_in):
        for kk in needed_kk:
            w_slab[(ci, kk)] = jnp.broadcast_to(
                w_ref[ci, :, kk:kk + 1], (c_pad, lpad))

    # Input rows: one load + one sublane broadcast per (ci); every needed shift
    # is produced once by rolling the already-replicated slab (XLU slot).
    xs = []
    for ci in range(c_in):
        row = jnp.broadcast_to(x_ref[0, ci:ci + 1, :], (c_pad, lpad))
        shifted = {
            d: (row if d == 0 else pltpu.roll(row, shift=lpad - d, axis=1))
            for d in needed_shifts
        }
        xs.append(shifted)

    # Polyphase accumulation: pure f32 VPU mul/add, no zero-upsampled MACs.
    phases = []
    for ph in range(s):
        acc = bias_slab
        for ci in range(c_in):
            for (kk, d) in phase_taps[ph]:
                acc = acc + xs[ci][d] * w_slab[(ci, kk)]
        phases.append(acc)

    # Fused de-interleave: out[:, s*m + ph] = phases[ph][:, m], realized as
    # tiny 0/1-select matmuls on the (otherwise idle) MXU so the store stays a
    # single unmasked lane-dense (c_pad, s*lpad) tile.
    rows = jax.lax.broadcasted_iota(jnp.int32, (lpad, s * lpad), 0)
    cols = jax.lax.broadcasted_iota(jnp.int32, (lpad, s * lpad), 1)
    inter = jnp.zeros((c_pad, s * lpad), jnp.float32)
    for ph in range(s):
        sel = (cols == s * rows + ph).astype(jnp.float32)
        inter = inter + jnp.dot(phases[ph], sel,
                                preferred_element_type=jnp.float32)

    # sigmoid(x) == 0.5 * (tanh(0.5 x) + 1): transcendental on EUP, fixups on VPU.
    o_ref[0, :, :] = 0.5 * (jnp.tanh(0.5 * inter) + 1.0)


def prepare_conv_params(w, b, c_pad=_C_PAD):
    """One-time parameter prep: pad weights/bias to sublane-dense channels."""
    c_in, c_out, k = w.shape
    assert c_out <= c_pad, "c_pad must cover all output channels"
    w_cols = jnp.zeros((c_in, c_pad, k), jnp.float32)
    w_cols = w_cols.at[:, :c_out, :].set(w.astype(jnp.float32))
    b_col = jnp.zeros((c_pad, 1), jnp.float32)
    b_col = b_col.at[:c_out, 0].set(b.astype(jnp.float32))
    return w_cols, b_col


def conv_transpose1d_sigmoid(x, w_cols, b_col, *, c_out, stride, padding,
                             output_padding):
    n, c_in, l = x.shape
    c_in_w, c_pad, k = w_cols.shape
    assert c_in == c_in_w
    assert c_out <= c_pad
    s = int(stride)
    l_out = (l - 1) * s - 2 * padding + k + output_padding
    # TODO(synk): ragged phase lengths (l_out % stride != 0) not needed here.
    assert l_out % s == 0
    l_half = l_out // s

    # Static polyphase tap table: out[s*m + ph] += x[m + d] * w[:, :, kk]
    phase_taps = []
    for ph in range(s):
        taps = []
        for kk in range(k):
            if (ph + padding - kk) % s == 0:
                d = (ph + padding - kk) // s
                taps.append((kk, d))
        phase_taps.append(tuple(taps))
    all_d = [d for taps in phase_taps for (_, d) in taps]
    # TODO(synk): negative shifts (padding larger than per-phase taps) unsupported.
    assert all(d >= 0 for d in all_d)
    max_d = max(all_d) if all_d else 0

    lpad = -(-(max(l, l_half) + max_d) // 128) * 128  # lane-dense width
    assert lpad >= l_half + max_d and lpad >= l       # roll wrap-around safety

    # The single wrapper prep op: lane pad of x.
    x_pad = jnp.pad(x.astype(jnp.float32), ((0, 0), (0, 0), (0, lpad - l)))

    kernel = functools.partial(_convt_poly_kernel, c_in=c_in, c_pad=c_pad,
                               lpad=lpad, s=s, phase_taps=tuple(phase_taps))
    n_taps = sum(len(t) for t in phase_taps)
    # CostEstimate reflects the padded work actually executed in-kernel
    # (polyphase VPU MACs + interleave matmuls + full-slab sigmoid).
    cost = pl.CostEstimate(
        flops=2 * n * (c_in * n_taps * c_pad * lpad
                       + s * c_pad * lpad * s * lpad),
        transcendentals=n * c_pad * s * lpad,
        bytes_accessed=4 * (n * c_in * lpad + c_in * c_pad * k + c_pad
                            + n * c_pad * s * lpad))

    out = pl.pallas_call(
        kernel,
        out_shape=jax.ShapeDtypeStruct((n, c_pad, s * lpad), jnp.float32),
        grid=(n,),
        in_specs=[
            pl.BlockSpec((1, c_in, lpad), lambda i: (i, 0, 0)),
            pl.BlockSpec((c_in, c_pad, k), lambda i: (0, 0, 0)),
            pl.BlockSpec((c_pad, 1), lambda i: (0, 0)),
        ],
        out_specs=pl.BlockSpec((1, c_pad, s * lpad), lambda i: (i, 0, 0)),
        compiler_params=pltpu.CompilerParams(
            dimension_semantics=("parallel",)),
        cost_estimate=cost,
    )(x_pad, w_cols, b_col)

    # Single post op: static crop of the padded, already-interleaved slab.
    return out[:, :c_out, :l_out]


def _reference(x, w, b, *, stride, padding, output_padding):
    # pure-JAX reference: conv_transpose1d == lhs-dilated correlation w/ flipped kernel
    c_in, c_out, k = w.shape
    w_reg = jnp.flip(jnp.transpose(w, (1, 0, 2)), axis=2)    # (C_out, C_in, K)
    pad_l = k - 1 - padding
    pad_r = k - 1 - padding + output_padding
    y = jax.lax.conv_general_dilated(
        x, w_reg, window_strides=(1,), padding=[(pad_l, pad_r)],
        lhs_dilation=(stride,), dimension_numbers=("NCH", "OIH", "NCH"))
    return jax.nn.sigmoid(y + b[None, :, None])


if __name__ == "__main__":
    key = jax.random.PRNGKey(0)
    k1, k2, k3 = jax.random.split(key, 3)

    N, C_IN, L = 1, 1, 186            # matches x1 = torch.randn(1, 1, 186)
    C_OUT, K = 4, 3                   # deterministic synthetic conv_transpose1d weight
    STRIDE, PADDING, OUTPUT_PADDING = 2, 1, 1   # leading elems of [2,1], [1,1], [1,0]

    x1 = jax.random.normal(k1, (N, C_IN, L), dtype=jnp.float32)
    w = 0.1 * jax.random.normal(k2, (C_IN, C_OUT, K), dtype=jnp.float32)
    b = 0.1 * jax.random.normal(k3, (C_OUT,), dtype=jnp.float32)

    # One-time parameter prep (padding hoisted out of the forward path).
    w_cols, b_col = prepare_conv_params(w, b)

    out = conv_transpose1d_sigmoid(x1, w_cols, b_col, c_out=C_OUT,
                                   stride=STRIDE, padding=PADDING,
                                   output_padding=OUTPUT_PADDING)
    out = jax.block_until_ready(out)

    ref = _reference(x1, w, b, stride=STRIDE, padding=PADDING,
                     output_padding=OUTPUT_PADDING)
    np.testing.assert_allclose(np.asarray(out), np.asarray(ref),
                               rtol=1e-5, atol=1e-5)
    print("KERNEL_OK")
</pallas_src>

<mosaic_0001>
module attributes {stable_mosaic.version = 11 : i64} {
  func.func @_convt_poly_kernel(%arg0: i32, %arg1: memref<1x1x256xf32, #tpu.memory_space<vmem>>, %arg2: memref<1x8x3xf32, #tpu.memory_space<vmem>>, %arg3: memref<8x1xf32, #tpu.memory_space<vmem>>, %arg4: memref<1x8x512xf32, #tpu.memory_space<vmem>>) attributes {dimension_semantics = [#tpu.dimension_semantics<parallel>], iteration_bounds = array<i64: 1>, scalar_prefetch = 0 : i64, scratch_operands = 0 : i64, tpu.core_type = #tpu.core_type<tc>, window_params = [{transform_indices = @transform_0, window_bounds = array<i64: 1, 1, 256>}, {pipeline_mode = #tpu.pipeline_mode<synchronous>, transform_indices = @transform_1, window_bounds = array<i64: 1, 8, 3>}, {pipeline_mode = #tpu.pipeline_mode<synchronous>, transform_indices = @transform_2, window_bounds = array<i64: 8, 1>}, {transform_indices = @transform_3, window_bounds = array<i64: 1, 8, 512>}]} {
    %c0 = arith.constant 0 : index
    %c0_0 = arith.constant 0 : index
    %0 = vector.load %arg3[%c0, %c0_0] : memref<8x1xf32, #tpu.memory_space<vmem>>, vector<8x1xf32>
    %1 = vector.shape_cast %0 : vector<8x1xf32> to vector<8x1xf32>
    %2 = vector.broadcast %1 : vector<8x1xf32> to vector<8x256xf32>
    %c0_1 = arith.constant 0 : index
    %c0_2 = arith.constant 0 : index
    %c0_3 = arith.constant 0 : index
    %3 = vector.load %arg2[%c0_1, %c0_2, %c0_3] : memref<1x8x3xf32, #tpu.memory_space<vmem>>, vector<1x8x1xf32>
    %4 = vector.shape_cast %3 : vector<1x8x1xf32> to vector<8x1xf32>
    %5 = vector.shape_cast %4 : vector<8x1xf32> to vector<8x1xf32>
    %6 = vector.broadcast %5 : vector<8x1xf32> to vector<8x256xf32>
    %c0_4 = arith.constant 0 : index
    %c0_5 = arith.constant 0 : index
    %c1 = arith.constant 1 : index
    %7 = vector.load %arg2[%c0_4, %c0_5, %c1] : memref<1x8x3xf32, #tpu.memory_space<vmem>>, vector<1x8x1xf32>
    %8 = vector.shape_cast %7 : vector<1x8x1xf32> to vector<8x1xf32>
    %9 = vector.shape_cast %8 : vector<8x1xf32> to vector<8x1xf32>
    %10 = vector.broadcast %9 : vector<8x1xf32> to vector<8x256xf32>
    %c0_6 = arith.constant 0 : index
    %c0_7 = arith.constant 0 : index
    %c2 = arith.constant 2 : index
    %11 = vector.load %arg2[%c0_6, %c0_7, %c2] : memref<1x8x3xf32, #tpu.memory_space<vmem>>, vector<1x8x1xf32>
    %12 = vector.shape_cast %11 : vector<1x8x1xf32> to vector<8x1xf32>
    %13 = vector.shape_cast %12 : vector<8x1xf32> to vector<8x1xf32>
    %14 = vector.broadcast %13 : vector<8x1xf32> to vector<8x256xf32>
    %c0_8 = arith.constant 0 : index
    %c0_9 = arith.constant 0 : index
    %c0_10 = arith.constant 0 : index
    %15 = vector.load %arg1[%c0_8, %c0_9, %c0_10] : memref<1x1x256xf32, #tpu.memory_space<vmem>>, vector<1x1x256xf32>
    %16 = vector.shape_cast %15 : vector<1x1x256xf32> to vector<1x256xf32>
    %17 = vector.shape_cast %16 : vector<1x256xf32> to vector<1x256xf32>
    %18 = vector.broadcast %17 : vector<1x256xf32> to vector<8x256xf32>
    %c255_i32 = arith.constant 255 : i32
    %19 = tpu.dynamic_rotate %18 by %c255_i32 dim 1 : vector<8x256xf32>, i32 -> vector<8x256xf32>
    %20 = arith.mulf %18, %10 : vector<8x256xf32>
    %21 = arith.addf %2, %20 : vector<8x256xf32>
    %22 = arith.mulf %19, %6 : vector<8x256xf32>
    %23 = arith.addf %2, %22 : vector<8x256xf32>
    %24 = arith.mulf %18, %14 : vector<8x256xf32>
    %25 = arith.addf %23, %24 : vector<8x256xf32>
    %26 = tpu.iota {dimensions = array<i32: 0>} : vector<256x512xi32>
    %27 = tpu.iota {dimensions = array<i32: 1>} : vector<256x512xi32>
    %cst = arith.constant 0.000000e+00 : f32
    %28 = vector.broadcast %cst : f32 to vector<8x512xf32>
    %c2_i32 = arith.constant 2 : i32
    %29 = vector.broadcast %c2_i32 : i32 to vector<256x512xi32>
    %30 = arith.muli %29, %26 : vector<256x512xi32>
    %c0_i32 = arith.constant 0 : i32
    %31 = vector.broadcast %c0_i32 : i32 to vector<256x512xi32>
    %32 = arith.addi %30, %31 : vector<256x512xi32>
    %33 = arith.cmpi eq, %27, %32 : vector<256x512xi32>
    %34 = arith.extui %33 : vector<256x512xi1> to vector<256x512xi32>
    %35 = arith.sitofp %34 : vector<256x512xi32> to vector<256x512xf32>
    %cst_11 = arith.constant dense<0.000000e+00> : vector<8x512xf32>
    %36 = tpu.matmul %21, %35, %cst_11 {dimension_numbers = #tpu.dot_dimension_numbers<[1], [0], [0], [1], [0, 0, 1, 1], [], []>} : vector<8x256xf32>, vector<256x512xf32>, vector<8x512xf32> -> vector<8x512xf32>
    %37 = arith.addf %28, %36 : vector<8x512xf32>
    %c2_i32_12 = arith.constant 2 : i32
    %38 = vector.broadcast %c2_i32_12 : i32 to vector<256x512xi32>
    %39 = arith.muli %38, %26 : vector<256x512xi32>
    %c1_i32 = arith.constant 1 : i32
    %40 = vector.broadcast %c1_i32 : i32 to vector<256x512xi32>
    %41 = arith.addi %39, %40 : vector<256x512xi32>
    %42 = arith.cmpi eq, %27, %41 : vector<256x512xi32>
    %43 = arith.extui %42 : vector<256x512xi1> to vector<256x512xi32>
    %44 = arith.sitofp %43 : vector<256x512xi32> to vector<256x512xf32>
    %cst_13 = arith.constant dense<0.000000e+00> : vector<8x512xf32>
    %45 = tpu.matmul %25, %44, %cst_13 {dimension_numbers = #tpu.dot_dimension_numbers<[1], [0], [0], [1], [0, 0, 1, 1], [], []>} : vector<8x256xf32>, vector<256x512xf32>, vector<8x512xf32> -> vector<8x512xf32>
    %46 = arith.addf %37, %45 : vector<8x512xf32>
    %cst_14 = arith.constant 5.000000e-01 : f32
    %47 = vector.broadcast %cst_14 : f32 to vector<8x512xf32>
    %48 = arith.mulf %47, %46 : vector<8x512xf32>
    %49 = math.tanh %48 : vector<8x512xf32>
    %cst_15 = arith.constant 1.000000e+00 : f32
    %50 = vector.broadcast %cst_15 : f32 to vector<8x512xf32>
    %51 = arith.addf %49, %50 : vector<8x512xf32>
    %cst_16 = arith.constant 5.000000e-01 : f32
    %52 = vector.broadcast %cst_16 : f32 to vector<8x512xf32>
    %53 = arith.mulf %52, %51 : vector<8x512xf32>
    %c0_17 = arith.constant 0 : index
    %c0_18 = arith.constant 0 : index
    %c0_19 = arith.constant 0 : index
    %54 = vector.load %arg4[%c0_17, %c0_18, %c0_19] : memref<1x8x512xf32, #tpu.memory_space<vmem>>, vector<1x8x512xf32>
    %55 = vector.shape_cast %54 : vector<1x8x512xf32> to vector<8x512xf32>
    %56 = vector.shape_cast %53 : vector<8x512xf32> to vector<1x8x512xf32>
    tpu.vector_store %arg4[%c0_17, %c0_18, %c0_19], %56 {strides = array<i32>} : memref<1x8x512xf32, #tpu.memory_space<vmem>>, vector<1x8x512xf32>,
    return
  }
  func.func @transform_0(%arg0: i32) -> (i32, i32, i32) {
    %c0_i32 = arith.constant 0 : i32
    %c0_i32_0 = arith.constant 0 : i32
    %c0_i32_1 = arith.constant 0 : i32
    return %arg0, %c0_i32, %c0_i32_0 : i32, i32, i32
  }
  func.func @transform_1(%arg0: i32) -> (i32, i32, i32) {
    %c0_i32 = arith.constant 0 : i32
    %c0_i32_0 = arith.constant 0 : i32
    %c0_i32_1 = arith.constant 0 : i32
    %c0_i32_2 = arith.constant 0 : i32
    return %c0_i32, %c0_i32_0, %c0_i32_1 : i32, i32, i32
  }
  func.func @transform_2(%arg0: i32) -> (i32, i32) {
    %c0_i32 = arith.constant 0 : i32
    %c0_i32_0 = arith.constant 0 : i32
    %c0_i32_1 = arith.constant 0 : i32
    return %c0_i32, %c0_i32_0 : i32, i32
  }
  func.func @transform_3(%arg0: i32) -> (i32, i32, i32) {
    %c0_i32 = arith.constant 0 : i32
    %c0_i32_0 = arith.constant 0 : i32
    %c0_i32_1 = arith.constant 0 : i32
    return %arg0, %c0_i32, %c0_i32_0 : i32, i32, i32
  }
}

</mosaic_0001>

<bundles_post_ra>
// kernel: tpu_custom_call.1
= control target key start
LH: loop header
LB: loop body
LE: loop exit
PB: predicated region body
PF: predicated region fallthrough
CT: control target
= control target key end

     0   :  { %v45_v2 = vlaneseq  ;;  %v1842_v3 = vmov 0   ;;  %s2944_s0 = inlined_call_operand.vmem [shape: f32[1,1,256], index: 0, kind: input, shape index: {}]   ;;  %s2945_s1 = inlined_call_operand.vmem [shape: f32[1,8,3], index: 1, kind: input, shape index: {}]   ;;  %s2946_s2 = inlined_call_operand.vmem [shape: f32[8,1], index: 2, kind: input, shape index: {}]   ;;  %s2947_s3 = inlined_call_operand.hbm [shape: f32[1,8,512], index: 3, kind: output, shape index: {}]  }
   0x1   :  { %v21_v0 = vld [vmem:[%s2945_s1] sm:$0xff]  ;;  %1804 = vset.pattern.permute.xlu1 %v1842_v3 }
   0x2   :  { %v35_v1 = vld [vmem:[%s2944_s0] sm:$0x3] }
   0x3   :  { %v1874_v4 = vperm.slane %v35_v1, 0 }
   0x4   :  { %8 = vsyncpa [#allocation3], 0  ;;  %24 = vperm.xlu1 %1804, %v21_v0   ;;  %v1843_v5 = vmov 2   ;;  %v1876_v6 = vand.u32 127, %v45_v2  ;;  %v1878_v7 = vshrl.u32 %v45_v2, 7  ;;  %s1844_s16 = smov 127  }
   0x5   :  { %1805 = vset.pattern.permute.xlu2 %v1843_v5  ;;  %41 = vrot.lane.b32.xlu0 %v1874_v4, %s1844_s16  ;;  %v1882_v8 = vperm.slane %v35_v1, 1  ;;  %v15_v21 = vld [vmem:[%s2946_s2] sm:$0xff]  ;;  %v1845_v34 = vmov 1   ;;  %v1846_v36 = vmov 1.0   ;;  %s1847_s2 = smov [#allocation2]   ;;  %s1277_s20 = sshll.u32 %s2947_s3, 4  ;;  %s1278_s20 = int_to_ptr.hbm [resolvable:$true] %s1277_s20 }
   0x6   :  { %32 = vperm.xlu2 %1805, %v21_v0   ;;  %v78_v9 = vadd.s32 120, %v1878_v7  ;;  %v94_v10 = vadd.s32 248, %v1878_v7  ;;  %v1887_v11 = vadd.s32 128, %v1876_v6  ;;  %v77_v12 = vadd.s32 112, %v1878_v7  ;;  %1807 = vset.pattern.permute.xlu0 %v1843_v5  ;;  %s1275_s17 = sshll.u32 %s1847_s2, 4  ;;  %s1276_s17 = int_to_ptr.vmem [resolvable:$true] %s1275_s17 }
   0x7   :  { %v93_v13 = vadd.s32 240, %v1878_v7  ;;  %v76_v14 = vadd.s32 104, %v1878_v7  ;;  %v92_v15 = vadd.s32 232, %v1878_v7  ;;  %v75_v16 = vadd.s32 96, %v1878_v7 }
   0x8   :  { %v1894_v17 = vmul.u32 2, %v78_v9  ;;  %v1896_v18 = vmul.u32 2, %v94_v10  ;;  %v1898_v19 = vmul.u32 2, %v77_v12  ;;  %v91_v20 = vadd.s32 224, %v1878_v7 }
   0x9   :  { %v1904_v22 = vmul.u32 2, %v93_v13  ;;  %v1906_v23 = vmul.u32 2, %v76_v14  ;;  %v1908_v24 = vmul.u32 2, %v92_v15  ;;  %v1910_v25 = vmul.u32 2, %v75_v16 }
   0xa   :  { %v1913_v26 = vadd.s32 1, %v1894_v17  ;;  %v1916_v27 = vadd.s32 1, %v1896_v18  ;;  %v1919_v28 = vadd.s32 1, %v1898_v19  ;;  %v1921_v29 = vmul.u32 2, %v91_v20 }
   0xb   :  { %v1924_v30 = vadd.s32 1, %v1904_v22  ;;  %v1927_v31 = vadd.s32 1, %v1906_v23  ;;  %v1930_v32 = vadd.s32 1, %v1908_v24  ;;  %v1933_v33 = vadd.s32 1, %v1910_v25 }
   0xc   :  { %18 = vperm.xlu1 %1804, %v15_v21   ;;  %vm606_vm0 = vcmp.eq.s32.totalorder %v1876_v6, %v1913_v26  ;;  %vm670_vm1 = vcmp.eq.s32.totalorder %v1876_v6, %v1916_v27  ;;  %vm607_vm2 = vcmp.eq.s32.totalorder %v1887_v11, %v1913_v26  ;;  %vm671_vm3 = vcmp.eq.s32.totalorder %v1887_v11, %v1916_v27 }
   0xd   :  { %43 = vrot.lane.b32.xlu0 %v1882_v8, %s1844_s16  ;;  %vm602_vm4 = vcmp.eq.s32.totalorder %v1876_v6, %v1919_v28  ;;  %vm666_vm5 = vcmp.eq.s32.totalorder %v1876_v6, %v1924_v30  ;;  %vm603_vm6 = vcmp.eq.s32.totalorder %v1887_v11, %v1919_v28  ;;  %v1952_v35 = vadd.s32 1, %v1921_v29  ;;  %1542 = vmatpush.msk.msra.mxu0 %vm606_vm0, %v1846_v36 }
   0xe   :  { %1806 = vset.pattern.permute.xlu2 %v1845_v34  ;;  %vm667_vm7 = vcmp.eq.s32.totalorder %v1887_v11, %v1924_v30  ;;  %vm598_vm8 = vcmp.eq.s32.totalorder %v1876_v6, %v1927_v31  ;;  %vm662_vm9 = vcmp.eq.s32.totalorder %v1876_v6, %v1930_v32  ;;  %v74_v37 = vadd.s32 88, %v1878_v7  ;;  %1558 = vmatpush.msk.msra.mxu1 %vm670_vm1, %v1846_v36 }
   0xf   :  { %28 = vperm.xlu2 %1806, %v21_v0   ;;  %1574 = vmatpush.msk.msra.mxu2 %vm607_vm2, %v1846_v36  ;;  %vm599_vm10 = vcmp.eq.s32.totalorder %v1887_v11, %v1927_v31  ;;  %vm663_vm11 = vcmp.eq.s32.totalorder %v1887_v11, %v1930_v32  ;;  %vm594_vm12 = vcmp.eq.s32.totalorder %v1876_v6, %v1933_v33  ;;  %v90_v38 = vadd.s32 216, %v1878_v7 }
  0x10   :  { %1590 = vmatpush.msk.msra.mxu3 %vm671_vm3, %v1846_v36  ;;  %1543 = vmatpush.msk.msra.mxu0 %vm602_vm4, %v1846_v36  ;;  %vm658_vm13 = vcmp.eq.s32.totalorder %v1876_v6, %v1952_v35  ;;  %vm595_vm14 = vcmp.eq.s32.totalorder %v1887_v11, %v1933_v33  ;;  %vm659_vm15 = vcmp.eq.s32.totalorder %v1887_v11, %v1952_v35  ;;  %v1991_v39 = vmul.u32 2, %v74_v37 }
  0x11   :  { %1559 = vmatpush.msk.msra.mxu1 %vm666_vm5, %v1846_v36  ;;  %1575 = vmatpush.msk.msra.mxu2 %vm603_vm6, %v1846_v36  ;;  %v2001_v40 = vmul.u32 2, %v90_v38  ;;  %v73_v41 = vadd.s32 80, %v1878_v7  ;;  %v89_v42 = vadd.s32 208, %v1878_v7  ;;  %v72_v43 = vadd.s32 72, %v1878_v7 }
  0x12   :  { %1591 = vmatpush.msk.msra.mxu3 %vm667_vm7, %v1846_v36  ;;  %1544 = vmatpush.msk.msra.mxu0 %vm598_vm8, %v1846_v36  ;;  %v2015_v44 = vadd.s32 1, %v1991_v39  ;;  %v88_v45 = vadd.s32 200, %v1878_v7  ;;  %v71_v46 = vadd.s32 64, %v1878_v7  ;;  %v87_v47 = vadd.s32 192, %v1878_v7 }
  0x13   :  { %1560 = vmatpush.msk.msra.mxu1 %vm662_vm9, %v1846_v36  ;;  %1576 = vmatpush.msk.msra.mxu2 %vm599_vm10, %v1846_v36  ;;  %v2029_v48 = vadd.s32 1, %v2001_v40  ;;  %v2031_v49 = vmul.u32 2, %v73_v41  ;;  %v2033_v50 = vmul.u32 2, %v89_v42  ;;  %v2035_v51 = vmul.u32 2, %v72_v43 }
  0x14   :  { %1592 = vmatpush.msk.msra.mxu3 %vm663_vm11, %v1846_v36  ;;  %1545 = vmatpush.msk.msra.mxu0 %vm594_vm12, %v1846_v36  ;;  %vm590_vm0 = vcmp.eq.s32.totalorder %v1876_v6, %v2015_v44  ;;  %vm591_vm1 = vcmp.eq.s32.totalorder %v1887_v11, %v2015_v44  ;;  %v2049_v52 = vmul.u32 2, %v88_v45  ;;  %v2051_v53 = vmul.u32 2, %v71_v46 }
  0x15   :  { %1561 = vmatpush.msk.msra.mxu1 %vm658_vm13, %v1846_v36  ;;  %1577 = vmatpush.msk.msra.mxu2 %vm595_vm14, %v1846_v36  ;;  %vm654_vm2 = vcmp.eq.s32.totalorder %v1876_v6, %v2029_v48  ;;  %vm655_vm3 = vcmp.eq.s32.totalorder %v1887_v11, %v2029_v48  ;;  %v2066_v54 = vadd.s32 1, %v2031_v49  ;;  %v2069_v55 = vadd.s32 1, %v2033_v50 }
  0x16   :  { %1593 = vmatpush.msk.msra.mxu3 %vm659_vm15, %v1846_v36  ;;  %1546 = vmatpush.msk.msra.mxu0 %vm590_vm0, %v1846_v36  ;;  %v2077_v56 = vadd.s32 1, %v2035_v51  ;;  %v2080_v57 = vadd.s32 1, %v2049_v52  ;;  %v2083_v58 = vadd.s32 1, %v2051_v53  ;;  %v2085_v59 = vmul.u32 2, %v87_v47 }
  0x17   :  { %1562 = vmatpush.msk.msra.mxu1 %vm654_vm2, %v1846_v36  ;;  %1578 = vmatpush.msk.msra.mxu2 %vm591_vm1, %v1846_v36  ;;  %vm586_vm4 = vcmp.eq.s32.totalorder %v1876_v6, %v2066_v54  ;;  %vm650_vm5 = vcmp.eq.s32.totalorder %v1876_v6, %v2069_v55  ;;  %vm587_vm6 = vcmp.eq.s32.totalorder %v1887_v11, %v2066_v54  ;;  %v70_v60 = vadd.s32 56, %v1878_v7 }
  0x18   :  { %1594 = vmatpush.msk.msra.mxu3 %vm655_vm3, %v1846_v36  ;;  %1547 = vmatpush.msk.msra.mxu0 %vm586_vm4, %v1846_v36  ;;  %vm651_vm7 = vcmp.eq.s32.totalorder %v1887_v11, %v2069_v55  ;;  %vm582_vm8 = vcmp.eq.s32.totalorder %v1876_v6, %v2077_v56  ;;  %vm646_vm9 = vcmp.eq.s32.totalorder %v1876_v6, %v2080_v57  ;;  %v2108_v61 = vadd.s32 1, %v2085_v59 }
  0x19   :  { %1563 = vmatpush.msk.msra.mxu1 %vm650_vm5, %v1846_v36  ;;  %1579 = vmatpush.msk.msra.mxu2 %vm587_vm6, %v1846_v36  ;;  %vm583_vm10 = vcmp.eq.s32.totalorder %v1887_v11, %v2077_v56  ;;  %vm647_vm11 = vcmp.eq.s32.totalorder %v1887_v11, %v2080_v57  ;;  %vm578_vm12 = vcmp.eq.s32.totalorder %v1876_v6, %v2083_v58  ;;  %v2118_v62 = vmul.u32 2, %v70_v60 }
  0x1a   :  { %1595 = vmatpush.msk.msra.mxu3 %vm651_vm7, %v1846_v36  ;;  %1548 = vmatpush.msk.msra.mxu0 %vm582_vm8, %v1846_v36  ;;  %vm642_vm13 = vcmp.eq.s32.totalorder %v1876_v6, %v2108_v61  ;;  %vm579_vm14 = vcmp.eq.s32.totalorder %v1887_v11, %v2083_v58  ;;  %vm643_vm15 = vcmp.eq.s32.totalorder %v1887_v11, %v2108_v61  ;;  %v86_v63 = vadd.s32 184, %v1878_v7 }
  0x1b   :  { %1564 = vmatpush.msk.msra.mxu1 %vm646_vm9, %v1846_v36  ;;  %1580 = vmatpush.msk.msra.mxu2 %vm583_vm10, %v1846_v36  ;;  %v2132_v0 = vadd.s32 1, %v2118_v62  ;;  %v69_v1 = vadd.s32 48, %v1878_v7  ;;  %v85_v2 = vadd.s32 176, %v1878_v7  ;;  %v68_v3 = vadd.s32 40, %v1878_v7 }
  0x1c   :  { %1596 = vmatpush.msk.msra.mxu3 %vm647_vm11, %v1846_v36  ;;  %1549 = vmatpush.msk.msra.mxu0 %vm578_vm12, %v1846_v36  ;;  %v2139_v5 = vmul.u32 2, %v86_v63  ;;  %v84_v9 = vadd.s32 168, %v1878_v7  ;;  %v67_v10 = vadd.s32 32, %v1878_v7  ;;  %v83_v12 = vadd.s32 160, %v1878_v7 }
  0x1d   :  { %1565 = vmatpush.msk.msra.mxu1 %vm642_vm13, %v1846_v36  ;;  %1581 = vmatpush.msk.msra.mxu2 %vm579_vm14, %v1846_v36  ;;  %vm574_vm0 = vcmp.eq.s32.totalorder %v1876_v6, %v2132_v0  ;;  %vm575_vm1 = vcmp.eq.s32.totalorder %v1887_v11, %v2132_v0  ;;  %v2156_v13 = vmul.u32 2, %v69_v1  ;;  %v2158_v14 = vmul.u32 2, %v85_v2 }
  0x1e   :  { %1597 = vmatpush.msk.msra.mxu3 %vm643_vm15, %v1846_v36  ;;  %1550 = vmatpush.msk.msra.mxu0 %vm574_vm0, %v1846_v36  ;;  %v2166_v15 = vadd.s32 1, %v2139_v5  ;;  %v2168_v16 = vmul.u32 2, %v68_v3  ;;  %v2170_v20 = vmul.u32 2, %v84_v9  ;;  %v2172_v21 = vmul.u32 2, %v67_v10 }
  0x1f   :  { %1582 = vmatpush.msk.msra.mxu2 %vm575_vm1, %v1846_v36  ;;  %v2176_v34 = vadd.s32 1, %v2156_v13  ;;  %v2179_v37 = vadd.s32 1, %v2158_v14  ;;  %v2181_v38 = vmul.u32 2, %v83_v12  ;;  %v66_v41 = vadd.s32 24, %v1878_v7 }
  0x20   :  { %2962 = vst [vmem:[#allocation5_spill] sm:$0xff] %v2168_v16  ;;  %vm638_vm2 = vcmp.eq.s32.totalorder %v1876_v6, %v2166_v15  ;;  %vm639_vm3 = vcmp.eq.s32.totalorder %v1887_v11, %v2166_v15  ;;  %v2189_v42 = vadd.s32 1, %v2168_v16  ;;  %v2192_v43 = vadd.s32 1, %v2170_v20 }
  0x21   :  { %2963 = vst [vmem:[#allocation6_spill] sm:$0xff] %v2170_v20  ;;  %1566 = vmatpush.msk.msra.mxu1 %vm638_vm2, %v1846_v36  ;;  %1598 = vmatpush.msk.msra.mxu3 %vm639_vm3, %v1846_v36  ;;  %vm570_vm4 = vcmp.eq.s32.totalorder %v1876_v6, %v2176_v34  ;;  %vm634_vm5 = vcmp.eq.s32.totalorder %v1876_v6, %v2179_v37  ;;  %v2203_v45 = vadd.s32 1, %v2172_v21  ;;  %v2214_v46 = vadd.s32 1, %v2181_v38 }
  0x22   :  { %2964 = vst [vmem:[#allocation7_spill] sm:$0xff] %v2172_v21  ;;  %vm571_vm6 = vcmp.eq.s32.totalorder %v1887_v11, %v2176_v34  ;;  %1551 = vmatpush.msk.msra.mxu0 %vm570_vm4, %v1846_v36  ;;  %vm635_vm7 = vcmp.eq.s32.totalorder %v1887_v11, %v2179_v37  ;;  %vm566_vm8 = vcmp.eq.s32.totalorder %v1876_v6, %v2189_v42  ;;  %v2224_v47 = vmul.u32 2, %v66_v41 }
  0x23   :  { %2965 = vst [vmem:[#allocation8_spill] sm:$0xff] %v2181_v38  ;;  %1583 = vmatpush.msk.msra.mxu2 %vm571_vm6, %v1846_v36  ;;  %vm630_vm9 = vcmp.eq.s32.totalorder %v1876_v6, %v2192_v43  ;;  %1567 = vmatpush.msk.msra.mxu1 %vm634_vm5, %v1846_v36  ;;  %vm567_vm10 = vcmp.eq.s32.totalorder %v1887_v11, %v2189_v42  ;;  %v82_v60 = vadd.s32 152, %v1878_v7  ;;  %v65_v1 = vadd.s32 16, %v1878_v7 }
  0x24   :  { %1599 = vmatpush.msk.msra.mxu3 %vm635_vm7, %v1846_v36  ;;  %vm631_vm11 = vcmp.eq.s32.totalorder %v1887_v11, %v2192_v43  ;;  %vm562_vm12 = vcmp.eq.s32.totalorder %v1876_v6, %v2203_v45  ;;  %2966 = vst [vmem:[#allocation9_spill] sm:$0xff] %v2224_v47  ;;  %1552 = vmatpush.msk.msra.mxu0 %vm566_vm8, %v1846_v36  ;;  %v2238_v63 = vadd.s32 1, %v2224_v47  ;;  %v81_v2 = vadd.s32 144, %v1878_v7 }
  0x25   :  { %1584 = vmatpush.msk.msra.mxu2 %vm567_vm10, %v1846_v36  ;;  %vm626_vm13 = vcmp.eq.s32.totalorder %v1876_v6, %v2214_v46  ;;  %vm563_vm14 = vcmp.eq.s32.totalorder %v1887_v11, %v2203_v45  ;;  %vm627_vm15 = vcmp.eq.s32.totalorder %v1887_v11, %v2214_v46  ;;  %1568 = vmatpush.msk.msra.mxu1 %vm630_vm9, %v1846_v36  ;;  %v64_v3 = vadd.s32 8, %v1878_v7 }
  0x26   :  { %1600 = vmatpush.msk.msra.mxu3 %vm631_vm11, %v1846_v36  ;;  %1553 = vmatpush.msk.msra.mxu0 %vm562_vm12, %v1846_v36  ;;  %v2245_v9 = vmul.u32 2, %v82_v60  ;;  %v80_v10 = vadd.s32 136, %v1878_v7  ;;  %v2249_v12 = vmul.u32 2, %v1878_v7  ;;  %v79_v41 = vadd.s32 128, %v1878_v7 }
  0x27   :  { %1585 = vmatpush.msk.msra.mxu2 %vm563_vm14, %v1846_v36  ;;  %1569 = vmatpush.msk.msra.mxu1 %vm626_vm13, %v1846_v36  ;;  %vm558_vm0 = vcmp.eq.s32.totalorder %v1876_v6, %v2238_v63  ;;  %vm559_vm1 = vcmp.eq.s32.totalorder %v1887_v11, %v2238_v63  ;;  %v2261_v60 = vmul.u32 2, %v65_v1  ;;  %v2263_v47 = vmul.u32 2, %v81_v2 }
  0x28   :  { %2967 = vst [vmem:[#allocation10_spill] sm:$0xff] %v2245_v9  ;;  %1601 = vmatpush.msk.msra.mxu3 %vm627_vm15, %v1846_v36  ;;  %1554 = vmatpush.msk.msra.mxu0 %vm558_vm0, %v1846_v36  ;;  %v2267_v7 = vadd.s32 1, %v2245_v9  ;;  %v2270_v38 = vmul.u32 2, %v64_v3  ;;  %v2272_v21 = vmul.u32 2, %v80_v10  ;;  %v2275_v20 = vadd.s32 1, %v2249_v12 }
  0x29   :  { %2968 = vst [vmem:[#allocation11_spill] sm:$0xff] %v2249_v12  ;;  %1586 = vmatpush.msk.msra.mxu2 %vm559_vm1, %v1846_v36  ;;  %v2278_v16 = vadd.s32 1, %v2261_v60  ;;  %v2281_v1 = vadd.s32 1, %v2263_v47  ;;  %v2283_v2 = vmul.u32 2, %v79_v41  ;;  %v2286_v9 = vadd.s32 256, %v1876_v6 }
  0x2a   :  { %vm622_vm2 = vcmp.eq.s32.totalorder %v1876_v6, %v2267_v7  ;;  %vm623_vm3 = vcmp.eq.s32.totalorder %v1887_v11, %v2267_v7  ;;  %v2293_v3 = vadd.s32 1, %v2270_v38  ;;  %v2296_v10 = vadd.s32 1, %v2272_v21 }
  0x2b   :  { %1570 = vmatpush.msk.msra.mxu1 %vm622_vm2, %v1846_v36  ;;  %1602 = vmatpush.msk.msra.mxu3 %vm623_vm3, %v1846_v36  ;;  %vm554_vm4 = vcmp.eq.s32.totalorder %v1876_v6, %v2278_v16  ;;  %vm618_vm5 = vcmp.eq.s32.totalorder %v1876_v6, %v2281_v1  ;;  %vm555_vm6 = vcmp.eq.s32.totalorder %v1887_v11, %v2278_v16  ;;  %v2307_v41 = vadd.s32 1, %v2283_v2 }
  0x2c   :  { %1555 = vmatpush.msk.msra.mxu0 %vm554_vm4, %v1846_v36  ;;  %1587 = vmatpush.msk.msra.mxu2 %vm555_vm6, %v1846_v36  ;;  %vm619_vm7 = vcmp.eq.s32.totalorder %v1887_v11, %v2281_v1  ;;  %vm550_vm8 = vcmp.eq.s32.totalorder %v1876_v6, %v2293_v3  ;;  %vm614_vm9 = vcmp.eq.s32.totalorder %v1876_v6, %v2296_v10  ;;  %v2318_v12 = vadd.s32 384, %v1876_v6 }
  0x2d   :  { %1571 = vmatpush.msk.msra.mxu1 %vm618_vm5, %v1846_v36  ;;  %1603 = vmatpush.msk.msra.mxu3 %vm619_vm7, %v1846_v36  ;;  %vm551_vm10 = vcmp.eq.s32.totalorder %v1887_v11, %v2293_v3  ;;  %vm615_vm11 = vcmp.eq.s32.totalorder %v1887_v11, %v2296_v10  ;;  %vm546_vm12 = vcmp.eq.s32.totalorder %v1876_v6, %v2275_v20 }
  0x2e   :  { %1556 = vmatpush.msk.msra.mxu0 %vm550_vm8, %v1846_v36  ;;  %1588 = vmatpush.msk.msra.mxu2 %vm551_vm10, %v1846_v36  ;;  %vm610_vm13 = vcmp.eq.s32.totalorder %v1876_v6, %v2307_v41  ;;  %vm547_vm14 = vcmp.eq.s32.totalorder %v1887_v11, %v2275_v20  ;;  %vm611_vm15 = vcmp.eq.s32.totalorder %v1887_v11, %v2307_v41 }
  0x2f   :  { %1572 = vmatpush.msk.msra.mxu1 %vm614_vm9, %v1846_v36  ;;  %1604 = vmatpush.msk.msra.mxu3 %vm615_vm11, %v1846_v36  ;;  %vm608_vm0 = vcmp.eq.s32.totalorder %v2286_v9, %v1913_v26  ;;  %vm672_vm1 = vcmp.eq.s32.totalorder %v2286_v9, %v1916_v27  ;;  %vm609_vm2 = vcmp.eq.s32.totalorder %v2318_v12, %v1913_v26 }
  0x30   :  { %1557 = vmatpush.msk.msra.mxu0 %vm546_vm12, %v1846_v36  ;;  %1589 = vmatpush.msk.msra.mxu2 %vm547_vm14, %v1846_v36  ;;  %vm673_vm3 = vcmp.eq.s32.totalorder %v2318_v12, %v1916_v27  ;;  %vm604_vm4 = vcmp.eq.s32.totalorder %v2286_v9, %v1919_v28  ;;  %vm668_vm5 = vcmp.eq.s32.totalorder %v2286_v9, %v1924_v30 }
  0x31   :  { %1573 = vmatpush.msk.msra.mxu1 %vm610_vm13, %v1846_v36  ;;  %1605 = vmatpush.msk.msra.mxu3 %vm611_vm15, %v1846_v36  ;;  %vm605_vm6 = vcmp.eq.s32.totalorder %v2318_v12, %v1919_v28  ;;  %vm669_vm7 = vcmp.eq.s32.totalorder %v2318_v12, %v1924_v30  ;;  %vm600_vm8 = vcmp.eq.s32.totalorder %v2286_v9, %v1927_v31 }
  0x32   :  { %1606 = vmatpush.msk.msrb.mxu0 %vm608_vm0, %v1846_v36  ;;  %1638 = vmatpush.msk.msrb.mxu2 %vm609_vm2, %v1846_v36  ;;  %vm664_vm9 = vcmp.eq.s32.totalorder %v2286_v9, %v1930_v32  ;;  %vm601_vm10 = vcmp.eq.s32.totalorder %v2318_v12, %v1927_v31  ;;  %vm665_vm11 = vcmp.eq.s32.totalorder %v2318_v12, %v1930_v32 }
  0x33   :  { %1622 = vmatpush.msk.msrb.mxu1 %vm672_vm1, %v1846_v36  ;;  %1654 = vmatpush.msk.msrb.mxu3 %vm673_vm3, %v1846_v36  ;;  %vm596_vm12 = vcmp.eq.s32.totalorder %v2286_v9, %v1933_v33  ;;  %vm660_vm13 = vcmp.eq.s32.totalorder %v2286_v9, %v1952_v35  ;;  %vm597_vm14 = vcmp.eq.s32.totalorder %v2318_v12, %v1933_v33 }
  0x34   :  { %1607 = vmatpush.msk.msrb.mxu0 %vm604_vm4, %v1846_v36  ;;  %1639 = vmatpush.msk.msrb.mxu2 %vm605_vm6, %v1846_v36  ;;  %vm661_vm15 = vcmp.eq.s32.totalorder %v2318_v12, %v1952_v35  ;;  %vm592_vm0 = vcmp.eq.s32.totalorder %v2286_v9, %v2015_v44  ;;  %vm656_vm1 = vcmp.eq.s32.totalorder %v2286_v9, %v2029_v48 }
  0x35   :  { %1623 = vmatpush.msk.msrb.mxu1 %vm668_vm5, %v1846_v36  ;;  %1655 = vmatpush.msk.msrb.mxu3 %vm669_vm7, %v1846_v36  ;;  %vm593_vm2 = vcmp.eq.s32.totalorder %v2318_v12, %v2015_v44  ;;  %vm657_vm3 = vcmp.eq.s32.totalorder %v2318_v12, %v2029_v48  ;;  %vm588_vm4 = vcmp.eq.s32.totalorder %v2286_v9, %v2066_v54 }
  0x36   :  { %1608 = vmatpush.msk.msrb.mxu0 %vm600_vm8, %v1846_v36  ;;  %1640 = vmatpush.msk.msrb.mxu2 %vm601_vm10, %v1846_v36  ;;  %vm652_vm5 = vcmp.eq.s32.totalorder %v2286_v9, %v2069_v55  ;;  %vm589_vm6 = vcmp.eq.s32.totalorder %v2318_v12, %v2066_v54  ;;  %vm653_vm7 = vcmp.eq.s32.totalorder %v2318_v12, %v2069_v55 }
  0x37   :  { %1624 = vmatpush.msk.msrb.mxu1 %vm664_vm9, %v1846_v36  ;;  %1656 = vmatpush.msk.msrb.mxu3 %vm665_vm11, %v1846_v36  ;;  %vm584_vm8 = vcmp.eq.s32.totalorder %v2286_v9, %v2077_v56  ;;  %vm648_vm9 = vcmp.eq.s32.totalorder %v2286_v9, %v2080_v57  ;;  %vm585_vm10 = vcmp.eq.s32.totalorder %v2318_v12, %v2077_v56 }
  0x38   :  { %1609 = vmatpush.msk.msrb.mxu0 %vm596_vm12, %v1846_v36  ;;  %1641 = vmatpush.msk.msrb.mxu2 %vm597_vm14, %v1846_v36  ;;  %vm649_vm11 = vcmp.eq.s32.totalorder %v2318_v12, %v2080_v57  ;;  %vm580_vm12 = vcmp.eq.s32.totalorder %v2286_v9, %v2083_v58  ;;  %vm581_vm14 = vcmp.eq.s32.totalorder %v2318_v12, %v2083_v58 }
  0x39   :  { %1625 = vmatpush.msk.msrb.mxu1 %vm660_vm13, %v1846_v36  ;;  %1657 = vmatpush.msk.msrb.mxu3 %vm661_vm15, %v1846_v36  ;;  %vm644_vm13 = vcmp.eq.s32.totalorder %v2286_v9, %v2108_v61  ;;  %vm645_vm15 = vcmp.eq.s32.totalorder %v2318_v12, %v2108_v61  ;;  %v2969_v61 = vld [vmem:[#allocation5_spill] sm:$0xff] }
  0x3a   :  { %1610 = vmatpush.msk.msrb.mxu0 %vm592_vm0, %v1846_v36  ;;  %1642 = vmatpush.msk.msrb.mxu2 %vm593_vm2, %v1846_v36  ;;  %vm576_vm0 = vcmp.eq.s32.totalorder %v2286_v9, %v2132_v0  ;;  %vm577_vm2 = vcmp.eq.s32.totalorder %v2318_v12, %v2132_v0  ;;  %v2970_v0 = vld [vmem:[#allocation6_spill] sm:$0xff] }
  0x3b   :  { %1626 = vmatpush.msk.msrb.mxu1 %vm656_vm1, %v1846_v36  ;;  %1658 = vmatpush.msk.msrb.mxu3 %vm657_vm3, %v1846_v36  ;;  %vm640_vm1 = vcmp.eq.s32.totalorder %v2286_v9, %v2166_v15  ;;  %vm641_vm3 = vcmp.eq.s32.totalorder %v2318_v12, %v2166_v15  ;;  %v2971_v15 = vld [vmem:[#allocation7_spill] sm:$0xff] }
  0x3c   :  { %1611 = vmatpush.msk.msrb.mxu0 %vm588_vm4, %v1846_v36  ;;  %1643 = vmatpush.msk.msrb.mxu2 %vm589_vm6, %v1846_v36  ;;  %vm572_vm4 = vcmp.eq.s32.totalorder %v2286_v9, %v2176_v34  ;;  %vm573_vm6 = vcmp.eq.s32.totalorder %v2318_v12, %v2176_v34  ;;  %v2974_v34 = vld [vmem:[#allocation10_spill] sm:$0xff] }
  0x3d   :  { %1627 = vmatpush.msk.msrb.mxu1 %vm652_vm5, %v1846_v36  ;;  %1659 = vmatpush.msk.msrb.mxu3 %vm653_vm7, %v1846_v36  ;;  %vm636_vm5 = vcmp.eq.s32.totalorder %v2286_v9, %v2179_v37  ;;  %vm637_vm7 = vcmp.eq.s32.totalorder %v2318_v12, %v2179_v37 }
  0x3e   :  { %1612 = vmatpush.msk.msrb.mxu0 %vm584_vm8, %v1846_v36  ;;  %1644 = vmatpush.msk.msrb.mxu2 %vm585_vm10, %v1846_v36  ;;  %vm568_vm8 = vcmp.eq.s32.totalorder %v2286_v9, %v2189_v42  ;;  %vm569_vm10 = vcmp.eq.s32.totalorder %v2318_v12, %v2189_v42 }
  0x3f   :  { %1628 = vmatpush.msk.msrb.mxu1 %vm648_vm9, %v1846_v36  ;;  %1660 = vmatpush.msk.msrb.mxu3 %vm649_vm11, %v1846_v36  ;;  %vm632_vm9 = vcmp.eq.s32.totalorder %v2286_v9, %v2192_v43  ;;  %vm633_vm11 = vcmp.eq.s32.totalorder %v2318_v12, %v2192_v43 }
  0x40   :  { %1613 = vmatpush.msk.msrb.mxu0 %vm580_vm12, %v1846_v36  ;;  %1645 = vmatpush.msk.msrb.mxu2 %vm581_vm14, %v1846_v36  ;;  %vm564_vm12 = vcmp.eq.s32.totalorder %v2286_v9, %v2203_v45  ;;  %vm565_vm14 = vcmp.eq.s32.totalorder %v2318_v12, %v2203_v45 }
  0x41   :  { %1629 = vmatpush.msk.msrb.mxu1 %vm644_vm13, %v1846_v36  ;;  %1661 = vmatpush.msk.msrb.mxu3 %vm645_vm15, %v1846_v36  ;;  %vm628_vm13 = vcmp.eq.s32.totalorder %v2286_v9, %v2214_v46  ;;  %vm629_vm15 = vcmp.eq.s32.totalorder %v2318_v12, %v2214_v46 }
  0x42   :  { %1614 = vmatpush.msk.msrb.mxu0 %vm576_vm0, %v1846_v36  ;;  %1646 = vmatpush.msk.msrb.mxu2 %vm577_vm2, %v1846_v36  ;;  %vm560_vm0 = vcmp.eq.s32.totalorder %v2286_v9, %v2238_v63  ;;  %vm561_vm2 = vcmp.eq.s32.totalorder %v2318_v12, %v2238_v63 }
  0x43   :  { %1630 = vmatpush.msk.msrb.mxu1 %vm640_vm1, %v1846_v36  ;;  %1662 = vmatpush.msk.msrb.mxu3 %vm641_vm3, %v1846_v36  ;;  %vm624_vm1 = vcmp.eq.s32.totalorder %v2286_v9, %v2267_v7  ;;  %vm625_vm3 = vcmp.eq.s32.totalorder %v2318_v12, %v2267_v7 }
  0x44   :  { %1615 = vmatpush.msk.msrb.mxu0 %vm572_vm4, %v1846_v36  ;;  %1647 = vmatpush.msk.msrb.mxu2 %vm573_vm6, %v1846_v36  ;;  %vm556_vm4 = vcmp.eq.s32.totalorder %v2286_v9, %v2278_v16  ;;  %vm557_vm6 = vcmp.eq.s32.totalorder %v2318_v12, %v2278_v16  ;;  %v2972_v16 = vld [vmem:[#allocation8_spill] sm:$0xff] }
  0x45   :  { %1631 = vmatpush.msk.msrb.mxu1 %vm636_vm5, %v1846_v36  ;;  %1663 = vmatpush.msk.msrb.mxu3 %vm637_vm7, %v1846_v36  ;;  %vm620_vm5 = vcmp.eq.s32.totalorder %v2286_v9, %v2281_v1  ;;  %vm621_vm7 = vcmp.eq.s32.totalorder %v2318_v12, %v2281_v1 }
  0x46   :  { %1616 = vmatpush.msk.msrb.mxu0 %vm568_vm8, %v1846_v36  ;;  %1648 = vmatpush.msk.msrb.mxu2 %vm569_vm10, %v1846_v36  ;;  %vm552_vm8 = vcmp.eq.s32.totalorder %v2286_v9, %v2293_v3  ;;  %vm553_vm10 = vcmp.eq.s32.totalorder %v2318_v12, %v2293_v3 }
  0x47   :  { %1632 = vmatpush.msk.msrb.mxu1 %vm632_vm9, %v1846_v36  ;;  %1664 = vmatpush.msk.msrb.mxu3 %vm633_vm11, %v1846_v36  ;;  %vm616_vm9 = vcmp.eq.s32.totalorder %v2286_v9, %v2296_v10  ;;  %vm617_vm11 = vcmp.eq.s32.totalorder %v2318_v12, %v2296_v10 }
  0x48   :  { %1617 = vmatpush.msk.msrb.mxu0 %vm564_vm12, %v1846_v36  ;;  %1649 = vmatpush.msk.msrb.mxu2 %vm565_vm14, %v1846_v36  ;;  %vm548_vm12 = vcmp.eq.s32.totalorder %v2286_v9, %v2275_v20  ;;  %vm549_vm14 = vcmp.eq.s32.totalorder %v2318_v12, %v2275_v20  ;;  %v2973_v20 = vld [vmem:[#allocation9_spill] sm:$0xff] }
  0x49   :  { %1633 = vmatpush.msk.msrb.mxu1 %vm628_vm13, %v1846_v36  ;;  %1665 = vmatpush.msk.msrb.mxu3 %vm629_vm15, %v1846_v36  ;;  %vm612_vm13 = vcmp.eq.s32.totalorder %v2286_v9, %v2307_v41  ;;  %vm613_vm15 = vcmp.eq.s32.totalorder %v2318_v12, %v2307_v41 }
  0x4a   :  { %1618 = vmatpush.msk.msrb.mxu0 %vm560_vm0, %v1846_v36  ;;  %1650 = vmatpush.msk.msrb.mxu2 %vm561_vm2, %v1846_v36  ;;  %vm47_vm0 = vcmp.lt.s32.totalorder %v1876_v6, 127  ;;  %vm254_vm2 = vcmp.eq.s32.totalorder %v1876_v6, %v1896_v18 }
  0x4b   :  { %1634 = vmatpush.msk.msrb.mxu1 %vm624_vm1, %v1846_v36  ;;  %1666 = vmatpush.msk.msrb.mxu3 %vm625_vm3, %v1846_v36  ;;  %vm190_vm1 = vcmp.eq.s32.totalorder %v1876_v6, %v1894_v17  ;;  %vm191_vm3 = vcmp.eq.s32.totalorder %v1887_v11, %v1894_v17 }
  0x4c   :  { %1619 = vmatpush.msk.msrb.mxu0 %vm556_vm4, %v1846_v36  ;;  %1651 = vmatpush.msk.msrb.mxu2 %vm557_vm6, %v1846_v36  ;;  %vm255_vm4 = vcmp.eq.s32.totalorder %v1887_v11, %v1896_v18  ;;  %vm250_vm6 = vcmp.eq.s32.totalorder %v1876_v6, %v1904_v22 }
  0x4d   :  { %1635 = vmatpush.msk.msrb.mxu1 %vm620_vm5, %v1846_v36  ;;  %1667 = vmatpush.msk.msrb.mxu3 %vm621_vm7, %v1846_v36  ;;  %vm186_vm5 = vcmp.eq.s32.totalorder %v1876_v6, %v1898_v19  ;;  %vm187_vm7 = vcmp.eq.s32.totalorder %v1887_v11, %v1898_v19 }
  0x4e   :  { %1620 = vmatpush.msk.msrb.mxu0 %vm552_vm8, %v1846_v36  ;;  %1652 = vmatpush.msk.msrb.mxu2 %vm553_vm10, %v1846_v36  ;;  %vm251_vm8 = vcmp.eq.s32.totalorder %v1887_v11, %v1904_v22  ;;  %vm246_vm10 = vcmp.eq.s32.totalorder %v1876_v6, %v1908_v24 }
  0x4f   :  { %1636 = vmatpush.msk.msrb.mxu1 %vm616_vm9, %v1846_v36  ;;  %1668 = vmatpush.msk.msrb.mxu3 %vm617_vm11, %v1846_v36  ;;  %vm182_vm9 = vcmp.eq.s32.totalorder %v1876_v6, %v1906_v23  ;;  %vm183_vm11 = vcmp.eq.s32.totalorder %v1887_v11, %v1906_v23 }
  0x50   :  { %1621 = vmatpush.msk.msrb.mxu0 %vm548_vm12, %v1846_v36  ;;  %1653 = vmatpush.msk.msrb.mxu2 %vm549_vm14, %v1846_v36  ;;  %vm247_vm12 = vcmp.eq.s32.totalorder %v1887_v11, %v1908_v24  ;;  %vm242_vm14 = vcmp.eq.s32.totalorder %v1876_v6, %v1921_v29 }
  0x51   :  { %1637 = vmatpush.msk.msrb.mxu1 %vm612_vm13, %v1846_v36  ;;  %1669 = vmatpush.msk.msrb.mxu3 %vm613_vm15, %v1846_v36  ;;  %vm178_vm13 = vcmp.eq.s32.totalorder %v1876_v6, %v1910_v25  ;;  %vm179_vm15 = vcmp.eq.s32.totalorder %v1887_v11, %v1910_v25 }
  0x60   :  { %v33_v30 = vpop.permute.xlu2 %32 }
  0x61   :  { %v58_v33 = vmul.f32 %v1874_v4, %v33_v30  ;;  %v59_v35 = vmul.f32 %v1882_v8, %v33_v30 }
  0x69   :  { %v29_v37 = vpop.permute.xlu2 %28 }
  0x6a   :  { %v50_v42 = vmul.f32 %v1874_v4, %v29_v37  ;;  %v51_v43 = vmul.f32 %v1882_v8, %v29_v37  ;;  %v2975_v4 = vld [vmem:[#allocation11_spill] sm:$0xff] }
  0x76   :  { %v25_v27 = vpop.permute.xlu1 %24 }
  0x77   :  { %v42_v26 = vpop.permute.xlu0 %41 }
  0x7e   :  { %v2537_v54 = vpop.permute.xlu1 %18 }
  0x7f   :  { %v44_v28 = vpop.permute.xlu0 %43  ;;  %v2732_v8 = vadd.f32 %v50_v42, %v2537_v54  ;;  %v2735_v45 = vadd.f32 %v51_v43, %v2537_v54 }
  0x80   :  { %v48_v31 = vsel %vm47_vm0, %v42_v26, %v44_v28  ;;  %v49_v32 = vsel %vm47_vm0, %v44_v28, %v42_v26  ;;  %vm243_vm0 = vcmp.eq.s32.totalorder %v1887_v11, %v1921_v29 }
  0x81   :  { %v54_v44 = vmul.f32 %v48_v31, %v25_v27  ;;  %v55_v48 = vmul.f32 %v49_v32, %v25_v27 }
  0x83   :  { %v56_v55 = vadd.f32 %v54_v44, %v2537_v54  ;;  %v57_v56 = vadd.f32 %v55_v48, %v2537_v54 }
  0x85   :  { %v60_v57 = vadd.f32 %v58_v33, %v56_v55  ;;  %v61_v58 = vadd.f32 %v59_v35, %v57_v56 }
  0x87   :  { %946 = vmatmul.f32.vlgmr.msra.gmra.mxu0 %v60_v57  ;;  %966 = vmatmul.f32.vlgmr.msra.gmra.mxu1 %v61_v58 }
  0x88   :  { %986 = vmatmul.f32.vlgmr.msra.gmra.mxu2 %v60_v57  ;;  %1006 = vmatmul.f32.vlgmr.msra.gmra.mxu3 %v61_v58 }
  0x89   :  { %1670 = vmatpush.msk.msra.mxu0 %vm190_vm1, %v1846_v36  ;;  %1686 = vmatpush.msk.msra.mxu1 %vm254_vm2, %v1846_v36  ;;  %vm174_vm1 = vcmp.eq.s32.totalorder %v1876_v6, %v1991_v39  ;;  %vm238_vm2 = vcmp.eq.s32.totalorder %v1876_v6, %v2001_v40 }
  0x8a   :  { %1702 = vmatpush.msk.msra.mxu2 %vm191_vm3, %v1846_v36  ;;  %1718 = vmatpush.msk.msra.mxu3 %vm255_vm4, %v1846_v36  ;;  %vm175_vm3 = vcmp.eq.s32.totalorder %v1887_v11, %v1991_v39  ;;  %vm239_vm4 = vcmp.eq.s32.totalorder %v1887_v11, %v2001_v40 }
  0x8b   :  { %1671 = vmatpush.msk.msra.mxu0 %vm186_vm5, %v1846_v36  ;;  %1687 = vmatpush.msk.msra.mxu1 %vm250_vm6, %v1846_v36  ;;  %vm170_vm5 = vcmp.eq.s32.totalorder %v1876_v6, %v2031_v49  ;;  %vm234_vm6 = vcmp.eq.s32.totalorder %v1876_v6, %v2033_v50 }
  0x8c   :  { %1703 = vmatpush.msk.msra.mxu2 %vm187_vm7, %v1846_v36  ;;  %1719 = vmatpush.msk.msra.mxu3 %vm251_vm8, %v1846_v36  ;;  %vm171_vm7 = vcmp.eq.s32.totalorder %v1887_v11, %v2031_v49  ;;  %vm235_vm8 = vcmp.eq.s32.totalorder %v1887_v11, %v2033_v50 }
  0x8d   :  { %1672 = vmatpush.msk.msra.mxu0 %vm182_vm9, %v1846_v36  ;;  %1688 = vmatpush.msk.msra.mxu1 %vm246_vm10, %v1846_v36  ;;  %vm166_vm9 = vcmp.eq.s32.totalorder %v1876_v6, %v2035_v51  ;;  %vm230_vm10 = vcmp.eq.s32.totalorder %v1876_v6, %v2049_v52 }
  0x8e   :  { %1704 = vmatpush.msk.msra.mxu2 %vm183_vm11, %v1846_v36  ;;  %1720 = vmatpush.msk.msra.mxu3 %vm247_vm12, %v1846_v36  ;;  %vm167_vm11 = vcmp.eq.s32.totalorder %v1887_v11, %v2035_v51  ;;  %vm231_vm12 = vcmp.eq.s32.totalorder %v1887_v11, %v2049_v52 }
  0x8f   :  { %1673 = vmatpush.msk.msra.mxu0 %vm178_vm13, %v1846_v36  ;;  %1689 = vmatpush.msk.msra.mxu1 %vm242_vm14, %v1846_v36  ;;  %vm162_vm13 = vcmp.eq.s32.totalorder %v1876_v6, %v2051_v53  ;;  %vm226_vm14 = vcmp.eq.s32.totalorder %v1876_v6, %v2085_v59 }
  0x90   :  { %1705 = vmatpush.msk.msra.mxu2 %vm179_vm15, %v1846_v36  ;;  %1721 = vmatpush.msk.msra.mxu3 %vm243_vm0, %v1846_v36  ;;  %vm163_vm15 = vcmp.eq.s32.totalorder %v1887_v11, %v2051_v53  ;;  %vm227_vm0 = vcmp.eq.s32.totalorder %v1887_v11, %v2085_v59 }
  0x91   :  { %1026 = vmatmul.f32.vlgmr.msrb.gmra.mxu0 %v60_v57  ;;  %1046 = vmatmul.f32.vlgmr.msrb.gmra.mxu1 %v61_v58 }
  0x92   :  { %1066 = vmatmul.f32.vlgmr.msrb.gmra.mxu2 %v60_v57  ;;  %1086 = vmatmul.f32.vlgmr.msrb.gmra.mxu3 %v61_v58 }
  0x93   :  { %1674 = vmatpush.msk.msra.mxu0 %vm174_vm1, %v1846_v36  ;;  %1690 = vmatpush.msk.msra.mxu1 %vm238_vm2, %v1846_v36  ;;  %vm158_vm1 = vcmp.eq.s32.totalorder %v1876_v6, %v2118_v62  ;;  %vm222_vm2 = vcmp.eq.s32.totalorder %v1876_v6, %v2139_v5 }
  0x94   :  { %1706 = vmatpush.msk.msra.mxu2 %vm175_vm3, %v1846_v36  ;;  %1722 = vmatpush.msk.msra.mxu3 %vm239_vm4, %v1846_v36  ;;  %vm159_vm3 = vcmp.eq.s32.totalorder %v1887_v11, %v2118_v62  ;;  %vm223_vm4 = vcmp.eq.s32.totalorder %v1887_v11, %v2139_v5 }
  0x95   :  { %1675 = vmatpush.msk.msra.mxu0 %vm170_vm5, %v1846_v36  ;;  %1691 = vmatpush.msk.msra.mxu1 %vm234_vm6, %v1846_v36  ;;  %vm154_vm5 = vcmp.eq.s32.totalorder %v1876_v6, %v2156_v13  ;;  %vm218_vm6 = vcmp.eq.s32.totalorder %v1876_v6, %v2158_v14 }
  0x96   :  { %1707 = vmatpush.msk.msra.mxu2 %vm171_vm7, %v1846_v36  ;;  %1723 = vmatpush.msk.msra.mxu3 %vm235_vm8, %v1846_v36  ;;  %vm155_vm7 = vcmp.eq.s32.totalorder %v1887_v11, %v2156_v13  ;;  %vm219_vm8 = vcmp.eq.s32.totalorder %v1887_v11, %v2158_v14 }
  0x97   :  { %1676 = vmatpush.msk.msra.mxu0 %vm166_vm9, %v1846_v36  ;;  %1692 = vmatpush.msk.msra.mxu1 %vm230_vm10, %v1846_v36  ;;  %vm150_vm9 = vcmp.eq.s32.totalorder %v1876_v6, %v2969_v61  ;;  %vm214_vm10 = vcmp.eq.s32.totalorder %v1876_v6, %v2970_v0 }
  0x98   :  { %1708 = vmatpush.msk.msra.mxu2 %vm167_vm11, %v1846_v36  ;;  %1724 = vmatpush.msk.msra.mxu3 %vm231_vm12, %v1846_v36  ;;  %vm151_vm11 = vcmp.eq.s32.totalorder %v1887_v11, %v2969_v61  ;;  %vm215_vm12 = vcmp.eq.s32.totalorder %v1887_v11, %v2970_v0 }
  0x99   :  { %1677 = vmatpush.msk.msra.mxu0 %vm162_vm13, %v1846_v36  ;;  %1693 = vmatpush.msk.msra.mxu1 %vm226_vm14, %v1846_v36  ;;  %vm146_vm13 = vcmp.eq.s32.totalorder %v1876_v6, %v2971_v15  ;;  %vm210_vm14 = vcmp.eq.s32.totalorder %v1876_v6, %v2972_v16 }
  0x9a   :  { %1709 = vmatpush.msk.msra.mxu2 %vm163_vm15, %v1846_v36  ;;  %1725 = vmatpush.msk.msra.mxu3 %vm227_vm0, %v1846_v36  ;;  %vm147_vm15 = vcmp.eq.s32.totalorder %v1887_v11, %v2971_v15  ;;  %vm211_vm0 = vcmp.eq.s32.totalorder %v1887_v11, %v2972_v16 }
  0x9b   :  { %1678 = vmatpush.msk.msra.mxu0 %vm158_vm1, %v1846_v36  ;;  %1694 = vmatpush.msk.msra.mxu1 %vm222_vm2, %v1846_v36  ;;  %vm142_vm1 = vcmp.eq.s32.totalorder %v1876_v6, %v2973_v20  ;;  %vm206_vm2 = vcmp.eq.s32.totalorder %v1876_v6, %v2974_v34 }
  0x9c   :  { %1710 = vmatpush.msk.msra.mxu2 %vm159_vm3, %v1846_v36  ;;  %1726 = vmatpush.msk.msra.mxu3 %vm223_vm4, %v1846_v36  ;;  %vm143_vm3 = vcmp.eq.s32.totalorder %v1887_v11, %v2973_v20  ;;  %vm207_vm4 = vcmp.eq.s32.totalorder %v1887_v11, %v2974_v34 }
  0x9d   :  { %1679 = vmatpush.msk.msra.mxu0 %vm154_vm5, %v1846_v36  ;;  %1695 = vmatpush.msk.msra.mxu1 %vm218_vm6, %v1846_v36  ;;  %vm138_vm5 = vcmp.eq.s32.totalorder %v1876_v6, %v2261_v60  ;;  %vm202_vm6 = vcmp.eq.s32.totalorder %v1876_v6, %v2263_v47 }
  0x9e   :  { %1711 = vmatpush.msk.msra.mxu2 %vm155_vm7, %v1846_v36  ;;  %1727 = vmatpush.msk.msra.mxu3 %vm219_vm8, %v1846_v36  ;;  %vm139_vm7 = vcmp.eq.s32.totalorder %v1887_v11, %v2261_v60  ;;  %vm203_vm8 = vcmp.eq.s32.totalorder %v1887_v11, %v2263_v47 }
  0x9f   :  { %1680 = vmatpush.msk.msra.mxu0 %vm150_vm9, %v1846_v36  ;;  %1696 = vmatpush.msk.msra.mxu1 %vm214_vm10, %v1846_v36  ;;  %vm134_vm9 = vcmp.eq.s32.totalorder %v1876_v6, %v2270_v38  ;;  %vm198_vm10 = vcmp.eq.s32.totalorder %v1876_v6, %v2272_v21 }
  0xa0   :  { %1712 = vmatpush.msk.msra.mxu2 %vm151_vm11, %v1846_v36  ;;  %1728 = vmatpush.msk.msra.mxu3 %vm215_vm12, %v1846_v36  ;;  %vm135_vm11 = vcmp.eq.s32.totalorder %v1887_v11, %v2270_v38  ;;  %vm199_vm12 = vcmp.eq.s32.totalorder %v1887_v11, %v2272_v21 }
  0xa1   :  { %1681 = vmatpush.msk.msra.mxu0 %vm146_vm13, %v1846_v36  ;;  %1697 = vmatpush.msk.msra.mxu1 %vm210_vm14, %v1846_v36  ;;  %vm130_vm13 = vcmp.eq.s32.totalorder %v1876_v6, %v2975_v4  ;;  %vm194_vm14 = vcmp.eq.s32.totalorder %v1876_v6, %v2283_v2 }
  0xa2   :  { %1713 = vmatpush.msk.msra.mxu2 %vm147_vm15, %v1846_v36  ;;  %1729 = vmatpush.msk.msra.mxu3 %vm211_vm0, %v1846_v36  ;;  %vm131_vm15 = vcmp.eq.s32.totalorder %v1887_v11, %v2975_v4  ;;  %vm195_vm0 = vcmp.eq.s32.totalorder %v1887_v11, %v2283_v2 }
  0xa3   :  { %1682 = vmatpush.msk.msra.mxu0 %vm142_vm1, %v1846_v36  ;;  %1698 = vmatpush.msk.msra.mxu1 %vm206_vm2, %v1846_v36  ;;  %vm192_vm1 = vcmp.eq.s32.totalorder %v2286_v9, %v1894_v17  ;;  %vm256_vm2 = vcmp.eq.s32.totalorder %v2286_v9, %v1896_v18 }
  0xa4   :  { %1714 = vmatpush.msk.msra.mxu2 %vm143_vm3, %v1846_v36  ;;  %1730 = vmatpush.msk.msra.mxu3 %vm207_vm4, %v1846_v36  ;;  %vm193_vm3 = vcmp.eq.s32.totalorder %v2318_v12, %v1894_v17  ;;  %vm257_vm4 = vcmp.eq.s32.totalorder %v2318_v12, %v1896_v18 }
  0xa5   :  { %1683 = vmatpush.msk.msra.mxu0 %vm138_vm5, %v1846_v36  ;;  %1699 = vmatpush.msk.msra.mxu1 %vm202_vm6, %v1846_v36  ;;  %vm188_vm5 = vcmp.eq.s32.totalorder %v2286_v9, %v1898_v19  ;;  %vm252_vm6 = vcmp.eq.s32.totalorder %v2286_v9, %v1904_v22 }
  0xa6   :  { %1715 = vmatpush.msk.msra.mxu2 %vm139_vm7, %v1846_v36  ;;  %1731 = vmatpush.msk.msra.mxu3 %vm203_vm8, %v1846_v36  ;;  %vm189_vm7 = vcmp.eq.s32.totalorder %v2318_v12, %v1898_v19  ;;  %vm253_vm8 = vcmp.eq.s32.totalorder %v2318_v12, %v1904_v22 }
  0xa7   :  { %1684 = vmatpush.msk.msra.mxu0 %vm134_vm9, %v1846_v36  ;;  %1700 = vmatpush.msk.msra.mxu1 %vm198_vm10, %v1846_v36  ;;  %vm184_vm9 = vcmp.eq.s32.totalorder %v2286_v9, %v1906_v23  ;;  %vm248_vm10 = vcmp.eq.s32.totalorder %v2286_v9, %v1908_v24 }
  0xa8   :  { %1716 = vmatpush.msk.msra.mxu2 %vm135_vm11, %v1846_v36  ;;  %1732 = vmatpush.msk.msra.mxu3 %vm199_vm12, %v1846_v36  ;;  %vm185_vm11 = vcmp.eq.s32.totalorder %v2318_v12, %v1906_v23  ;;  %vm249_vm12 = vcmp.eq.s32.totalorder %v2318_v12, %v1908_v24 }
  0xa9   :  { %1685 = vmatpush.msk.msra.mxu0 %vm130_vm13, %v1846_v36  ;;  %1701 = vmatpush.msk.msra.mxu1 %vm194_vm14, %v1846_v36  ;;  %vm180_vm13 = vcmp.eq.s32.totalorder %v2286_v9, %v1910_v25  ;;  %vm244_vm14 = vcmp.eq.s32.totalorder %v2286_v9, %v1921_v29 }
  0xaa   :  { %1717 = vmatpush.msk.msra.mxu2 %vm131_vm15, %v1846_v36  ;;  %1733 = vmatpush.msk.msra.mxu3 %vm195_vm0, %v1846_v36  ;;  %vm181_vm15 = vcmp.eq.s32.totalorder %v2318_v12, %v1910_v25  ;;  %vm245_vm0 = vcmp.eq.s32.totalorder %v2318_v12, %v1921_v29 }
  0xab   :  { %1106 = vmatmul.f32.vlgmr.msra.gmra.mxu0 %v2732_v8  ;;  %1126 = vmatmul.f32.vlgmr.msra.gmra.mxu1 %v2735_v45 }
  0xac   :  { %1146 = vmatmul.f32.vlgmr.msra.gmra.mxu2 %v2732_v8  ;;  %1166 = vmatmul.f32.vlgmr.msra.gmra.mxu3 %v2735_v45 }
  0xad   :  { %1734 = vmatpush.msk.msrb.mxu0 %vm192_vm1, %v1846_v36  ;;  %1750 = vmatpush.msk.msrb.mxu1 %vm256_vm2, %v1846_v36  ;;  %vm176_vm1 = vcmp.eq.s32.totalorder %v2286_v9, %v1991_v39  ;;  %vm240_vm2 = vcmp.eq.s32.totalorder %v2286_v9, %v2001_v40 }
  0xae   :  { %1766 = vmatpush.msk.msrb.mxu2 %vm193_vm3, %v1846_v36  ;;  %1782 = vmatpush.msk.msrb.mxu3 %vm257_vm4, %v1846_v36  ;;  %vm177_vm3 = vcmp.eq.s32.totalorder %v2318_v12, %v1991_v39  ;;  %vm241_vm4 = vcmp.eq.s32.totalorder %v2318_v12, %v2001_v40 }
  0xaf   :  { %1735 = vmatpush.msk.msrb.mxu0 %vm188_vm5, %v1846_v36  ;;  %1751 = vmatpush.msk.msrb.mxu1 %vm252_vm6, %v1846_v36  ;;  %vm172_vm5 = vcmp.eq.s32.totalorder %v2286_v9, %v2031_v49  ;;  %vm236_vm6 = vcmp.eq.s32.totalorder %v2286_v9, %v2033_v50 }
  0xb0   :  { %1767 = vmatpush.msk.msrb.mxu2 %vm189_vm7, %v1846_v36  ;;  %1783 = vmatpush.msk.msrb.mxu3 %vm253_vm8, %v1846_v36  ;;  %vm173_vm7 = vcmp.eq.s32.totalorder %v2318_v12, %v2031_v49  ;;  %vm237_vm8 = vcmp.eq.s32.totalorder %v2318_v12, %v2033_v50 }
  0xb1   :  { %1736 = vmatpush.msk.msrb.mxu0 %vm184_vm9, %v1846_v36  ;;  %1752 = vmatpush.msk.msrb.mxu1 %vm248_vm10, %v1846_v36  ;;  %vm168_vm9 = vcmp.eq.s32.totalorder %v2286_v9, %v2035_v51  ;;  %vm232_vm10 = vcmp.eq.s32.totalorder %v2286_v9, %v2049_v52 }
  0xb2   :  { %1768 = vmatpush.msk.msrb.mxu2 %vm185_vm11, %v1846_v36  ;;  %1784 = vmatpush.msk.msrb.mxu3 %vm249_vm12, %v1846_v36  ;;  %vm169_vm11 = vcmp.eq.s32.totalorder %v2318_v12, %v2035_v51  ;;  %vm233_vm12 = vcmp.eq.s32.totalorder %v2318_v12, %v2049_v52 }
  0xb3   :  { %1737 = vmatpush.msk.msrb.mxu0 %vm180_vm13, %v1846_v36  ;;  %1753 = vmatpush.msk.msrb.mxu1 %vm244_vm14, %v1846_v36  ;;  %vm164_vm13 = vcmp.eq.s32.totalorder %v2286_v9, %v2051_v53  ;;  %vm228_vm14 = vcmp.eq.s32.totalorder %v2286_v9, %v2085_v59 }
  0xb4   :  { %1769 = vmatpush.msk.msrb.mxu2 %vm181_vm15, %v1846_v36  ;;  %1785 = vmatpush.msk.msrb.mxu3 %vm245_vm0, %v1846_v36  ;;  %vm165_vm15 = vcmp.eq.s32.totalorder %v2318_v12, %v2051_v53  ;;  %vm229_vm0 = vcmp.eq.s32.totalorder %v2318_v12, %v2085_v59 }
  0xb5   :  { %1738 = vmatpush.msk.msrb.mxu0 %vm176_vm1, %v1846_v36  ;;  %1754 = vmatpush.msk.msrb.mxu1 %vm240_vm2, %v1846_v36  ;;  %vm160_vm1 = vcmp.eq.s32.totalorder %v2286_v9, %v2118_v62  ;;  %vm224_vm2 = vcmp.eq.s32.totalorder %v2286_v9, %v2139_v5 }
  0xb6   :  { %1770 = vmatpush.msk.msrb.mxu2 %vm177_vm3, %v1846_v36  ;;  %1786 = vmatpush.msk.msrb.mxu3 %vm241_vm4, %v1846_v36  ;;  %vm161_vm3 = vcmp.eq.s32.totalorder %v2318_v12, %v2118_v62  ;;  %vm225_vm4 = vcmp.eq.s32.totalorder %v2318_v12, %v2139_v5 }
  0xb7   :  { %1739 = vmatpush.msk.msrb.mxu0 %vm172_vm5, %v1846_v36  ;;  %1755 = vmatpush.msk.msrb.mxu1 %vm236_vm6, %v1846_v36  ;;  %vm156_vm5 = vcmp.eq.s32.totalorder %v2286_v9, %v2156_v13  ;;  %vm220_vm6 = vcmp.eq.s32.totalorder %v2286_v9, %v2158_v14 }
  0xb8   :  { %1771 = vmatpush.msk.msrb.mxu2 %vm173_vm7, %v1846_v36  ;;  %1787 = vmatpush.msk.msrb.mxu3 %vm237_vm8, %v1846_v36  ;;  %vm157_vm7 = vcmp.eq.s32.totalorder %v2318_v12, %v2156_v13  ;;  %vm221_vm8 = vcmp.eq.s32.totalorder %v2318_v12, %v2158_v14 }
  0xb9   :  { %1740 = vmatpush.msk.msrb.mxu0 %vm168_vm9, %v1846_v36  ;;  %1756 = vmatpush.msk.msrb.mxu1 %vm232_vm10, %v1846_v36  ;;  %vm152_vm9 = vcmp.eq.s32.totalorder %v2286_v9, %v2969_v61  ;;  %vm216_vm10 = vcmp.eq.s32.totalorder %v2286_v9, %v2970_v0 }
  0xba   :  { %1772 = vmatpush.msk.msrb.mxu2 %vm169_vm11, %v1846_v36  ;;  %1788 = vmatpush.msk.msrb.mxu3 %vm233_vm12, %v1846_v36  ;;  %vm153_vm11 = vcmp.eq.s32.totalorder %v2318_v12, %v2969_v61  ;;  %vm217_vm12 = vcmp.eq.s32.totalorder %v2318_v12, %v2970_v0 }
  0xbb   :  { %1741 = vmatpush.msk.msrb.mxu0 %vm164_vm13, %v1846_v36  ;;  %1757 = vmatpush.msk.msrb.mxu1 %vm228_vm14, %v1846_v36  ;;  %vm148_vm13 = vcmp.eq.s32.totalorder %v2286_v9, %v2971_v15  ;;  %vm212_vm14 = vcmp.eq.s32.totalorder %v2286_v9, %v2972_v16 }
  0xbc   :  { %1773 = vmatpush.msk.msrb.mxu2 %vm165_vm15, %v1846_v36  ;;  %1789 = vmatpush.msk.msrb.mxu3 %vm229_vm0, %v1846_v36  ;;  %vm149_vm15 = vcmp.eq.s32.totalorder %v2318_v12, %v2971_v15  ;;  %vm213_vm0 = vcmp.eq.s32.totalorder %v2318_v12, %v2972_v16 }
  0xbd   :  { %1742 = vmatpush.msk.msrb.mxu0 %vm160_vm1, %v1846_v36  ;;  %1758 = vmatpush.msk.msrb.mxu1 %vm224_vm2, %v1846_v36  ;;  %vm144_vm1 = vcmp.eq.s32.totalorder %v2286_v9, %v2973_v20  ;;  %vm208_vm2 = vcmp.eq.s32.totalorder %v2286_v9, %v2974_v34 }
  0xbe   :  { %1774 = vmatpush.msk.msrb.mxu2 %vm161_vm3, %v1846_v36  ;;  %1790 = vmatpush.msk.msrb.mxu3 %vm225_vm4, %v1846_v36  ;;  %vm145_vm3 = vcmp.eq.s32.totalorder %v2318_v12, %v2973_v20  ;;  %vm209_vm4 = vcmp.eq.s32.totalorder %v2318_v12, %v2974_v34 }
  0xbf   :  { %1743 = vmatpush.msk.msrb.mxu0 %vm156_vm5, %v1846_v36  ;;  %1759 = vmatpush.msk.msrb.mxu1 %vm220_vm6, %v1846_v36  ;;  %vm140_vm5 = vcmp.eq.s32.totalorder %v2286_v9, %v2261_v60  ;;  %vm204_vm6 = vcmp.eq.s32.totalorder %v2286_v9, %v2263_v47 }
  0xc0   :  { %1775 = vmatpush.msk.msrb.mxu2 %vm157_vm7, %v1846_v36  ;;  %1791 = vmatpush.msk.msrb.mxu3 %vm221_vm8, %v1846_v36  ;;  %vm141_vm7 = vcmp.eq.s32.totalorder %v2318_v12, %v2261_v60  ;;  %vm205_vm8 = vcmp.eq.s32.totalorder %v2318_v12, %v2263_v47 }
  0xc1   :  { %1744 = vmatpush.msk.msrb.mxu0 %vm152_vm9, %v1846_v36  ;;  %1760 = vmatpush.msk.msrb.mxu1 %vm216_vm10, %v1846_v36  ;;  %vm136_vm9 = vcmp.eq.s32.totalorder %v2286_v9, %v2270_v38  ;;  %vm200_vm10 = vcmp.eq.s32.totalorder %v2286_v9, %v2272_v21 }
  0xc2   :  { %1776 = vmatpush.msk.msrb.mxu2 %vm153_vm11, %v1846_v36  ;;  %1792 = vmatpush.msk.msrb.mxu3 %vm217_vm12, %v1846_v36  ;;  %vm137_vm11 = vcmp.eq.s32.totalorder %v2318_v12, %v2270_v38  ;;  %vm201_vm12 = vcmp.eq.s32.totalorder %v2318_v12, %v2272_v21 }
  0xc3   :  { %1745 = vmatpush.msk.msrb.mxu0 %vm148_vm13, %v1846_v36  ;;  %1761 = vmatpush.msk.msrb.mxu1 %vm212_vm14, %v1846_v36  ;;  %vm132_vm13 = vcmp.eq.s32.totalorder %v2286_v9, %v2975_v4  ;;  %vm196_vm14 = vcmp.eq.s32.totalorder %v2286_v9, %v2283_v2 }
  0xc4   :  { %1777 = vmatpush.msk.msrb.mxu2 %vm149_vm15, %v1846_v36  ;;  %1793 = vmatpush.msk.msrb.mxu3 %vm213_vm0, %v1846_v36  ;;  %vm133_vm15 = vcmp.eq.s32.totalorder %v2318_v12, %v2975_v4  ;;  %vm197_vm0 = vcmp.eq.s32.totalorder %v2318_v12, %v2283_v2 }
  0xc5   :  { %1746 = vmatpush.msk.msrb.mxu0 %vm144_vm1, %v1846_v36  ;;  %1762 = vmatpush.msk.msrb.mxu1 %vm208_vm2, %v1846_v36 }
  0xc6   :  { %1778 = vmatpush.msk.msrb.mxu2 %vm145_vm3, %v1846_v36  ;;  %1794 = vmatpush.msk.msrb.mxu3 %vm209_vm4, %v1846_v36 }
  0xc7   :  { %1747 = vmatpush.msk.msrb.mxu0 %vm140_vm5, %v1846_v36  ;;  %1763 = vmatpush.msk.msrb.mxu1 %vm204_vm6, %v1846_v36 }
  0xc8   :  { %1779 = vmatpush.msk.msrb.mxu2 %vm141_vm7, %v1846_v36  ;;  %1795 = vmatpush.msk.msrb.mxu3 %vm205_vm8, %v1846_v36 }
  0xc9   :  { %1748 = vmatpush.msk.msrb.mxu0 %vm136_vm9, %v1846_v36  ;;  %1764 = vmatpush.msk.msrb.mxu1 %vm200_vm10, %v1846_v36 }
  0xca   :  { %1780 = vmatpush.msk.msrb.mxu2 %vm137_vm11, %v1846_v36  ;;  %1796 = vmatpush.msk.msrb.mxu3 %vm201_vm12, %v1846_v36 }
  0xcb   :  { %1749 = vmatpush.msk.msrb.mxu0 %vm132_vm13, %v1846_v36  ;;  %1765 = vmatpush.msk.msrb.mxu1 %vm196_vm14, %v1846_v36 }
  0xcc   :  { %1781 = vmatpush.msk.msrb.mxu2 %vm133_vm15, %v1846_v36  ;;  %1797 = vmatpush.msk.msrb.mxu3 %vm197_vm0, %v1846_v36 }
  0xcd   :  { %1186 = vmatmul.f32.vlgmr.msrb.gmra.mxu0 %v2732_v8  ;;  %1206 = vmatmul.f32.vlgmr.msrb.gmra.mxu1 %v2735_v45 }
  0xce   :  { %1226 = vmatmul.f32.vlgmr.msrb.gmra.mxu2 %v2732_v8  ;;  %1246 = vmatmul.f32.vlgmr.msrb.gmra.mxu3 %v2735_v45 }
 0x104   :  { %v947_v6 = vpop.f32.mrf.mxu0  ;;  %v967_v11 = vpop.f32.mrf.mxu1 }
 0x105   :  { %v968_v23 = vadd.f32 %v967_v11, %v947_v6 }
 0x10b   :  { %v987_v17 = vpop.f32.mrf.mxu2  ;;  %v1007_v18 = vpop.f32.mrf.mxu3 }
 0x10c   :  { %v1008_v50 = vadd.f32 %v1007_v18, %v987_v17 }
 0x10e   :  { %v1027_v19 = vpop.f32.mrf.mxu0  ;;  %v1047_v22 = vpop.f32.mrf.mxu1 }
 0x10f   :  { %v1048_v47 = vadd.f32 %v1047_v22, %v1027_v19 }
 0x115   :  { %v1067_v24 = vpop.f32.mrf.mxu2  ;;  %v1087_v29 = vpop.f32.mrf.mxu3 }
 0x116   :  { %v1088_v1 = vadd.f32 %v1087_v29, %v1067_v24 }
 0x128   :  { %v1107_v25 = vpop.f32.mrf.mxu0  ;;  %v1127_v36 = vpop.f32.mrf.mxu1 }
 0x129   :  { %v1108_v39 = vadd.f32 %v1107_v25, %v968_v23 }
 0x12b   :  { %v1128_v40 = vadd.f32 %v1127_v36, %v1108_v39 }
 0x12d   :  { %v1250_v49 = vmul.f32 0.5, %v1128_v40 }
 0x12f   :  { %1808 = vtanh.f32 %v1250_v49  ;;  %v1147_v51 = vpop.f32.mrf.mxu2  ;;  %v1167_v53 = vpop.f32.mrf.mxu3 }
 0x130   :  { %v1148_v52 = vadd.f32 %v1147_v51, %v1008_v50 }
 0x132   :  { %v1168_v59 = vadd.f32 %v1167_v53, %v1148_v52 }
 0x134   :  { %v1251_v62 = vmul.f32 0.5, %v1168_v59 }
 0x135   :  { %v1809_v5 = vpop.eup %1808 }
 0x136   :  { %v1258_v13 = vadd.f32 1.0, %v1809_v5  ;;  %1810 = vtanh.f32 %v1251_v62 }
 0x138   :  { %v1262_v14 = vmul.f32 0.5, %v1258_v13 }
 0x13a   :  { %1266 = vst [vmem:[#allocation2] sm:$0xff] %v1262_v14 }
 0x13c   :  { %v1811_v21 = vpop.eup %1810 }
 0x13d   :  { %v1259_v38 = vadd.f32 1.0, %v1811_v21 }
 0x13f   :  { %v1263_v46 = vmul.f32 0.5, %v1259_v38 }
 0x141   :  { %1267 = vst [vmem:[#allocation2 + $0x8] sm:$0xff] %v1263_v46 }
 0x14a   :  { %v1187_v63 = vpop.f32.mrf.mxu0  ;;  %v1207_v12 = vpop.f32.mrf.mxu1 }
 0x14b   :  { %v1188_v9 = vadd.f32 %v1187_v63, %v1048_v47 }
 0x14d   :  { %v1208_v60 = vadd.f32 %v1207_v12, %v1188_v9 }
 0x14f   :  { %v1252_v7 = vmul.f32 0.5, %v1208_v60 }
 0x151   :  { %1812 = vtanh.f32 %v1252_v7  ;;  %v1227_v2 = vpop.f32.mrf.mxu2  ;;  %v1247_v10 = vpop.f32.mrf.mxu3 }
 0x152   :  { %v1228_v3 = vadd.f32 %v1227_v2, %v1088_v1 }
 0x154   :  { %v1248_v41 = vadd.f32 %v1247_v10, %v1228_v3 }
 0x156   :  { %v1253_v26 = vmul.f32 0.5, %v1248_v41 }
 0x157   :  { %v1813_v27 = vpop.eup %1812 }
 0x158   :  { %v1260_v28 = vadd.f32 1.0, %v1813_v27  ;;  %1814 = vtanh.f32 %v1253_v26 }
 0x15a   :  { %v1264_v30 = vmul.f32 0.5, %v1260_v28 }
 0x15c   :  { %1268 = vst [vmem:[#allocation2 + $0x10] sm:$0xff] %v1264_v30 }
 0x15e   :  { %v1815_v31 = vpop.eup %1814 }
 0x15f   :  { %v1261_v32 = vadd.f32 1.0, %v1815_v31 }
 0x161   :  { %v1265_v33 = vmul.f32 0.5, %v1261_v32 }
 0x163   :  { %1269 = vst [vmem:[#allocation2 + $0x18] sm:$0xff] %v1265_v33 }
 0x164   :  { %1280 = dma.vmem_to_hbm [thread:$0]  %s1276_s17, 512, %s1278_s20, [#allocation3]  }
 0x165   :  { %1840 = dma.done.wait [#allocation3], 512  }
 0x166   :  { %1841 = vsyncadd [#allocation3], 4294966784 }
 0x167   :  { %1285 = vsyncpa [#allocation3], 1 }

</bundles_post_ra>
